<compile_context>
chip_gen: v7x
topology: tpu7x:2x2x1
jax: 0.10.0
libtpu: 0.0.40
codegen_flags: <defaults>
</compile_context>

<pallas_src>
import functools

import jax
import jax.numpy as jnp
from jax.experimental import pallas as pl
from jax.experimental.pallas import tpu as pltpu


_LANE = 128                        # lane width for packed slabs
_TB_MAX = 256                      # MXU M dim on v6e/v7x (v5e only needs 128)
_VMEM_STREAM_BUDGET = 20 * 1024 * 1024   # double-buffered per-step stream budget


def _round_up(x, m):
    return ((x + m - 1) // m) * m


def _pick_batch_tile(batch, row_stream_bytes):
    """Largest multiple-of-8 batch tile within the VMEM stream budget."""
    tb = (_VMEM_STREAM_BUDGET // max(row_stream_bytes, 1)) // 8 * 8
    tb = max(8, min(_TB_MAX, tb))
    if batch > 8:
        # keep >= 2 grid steps (v7x megacore sharding; pipeline overlap)
        tb = min(tb, _round_up(-(-batch // 2), 8))
    tb = min(tb, _round_up(batch, 8))
    return tb


_w_idx = lambda i: (0, 0)


def _weight_spec(shape):
    # Grid-invariant weights: request single buffering (halves weight VMEM).
    try:
        return pl.BlockSpec(shape, _w_idx, pipeline_mode=pl.Buffered(1))
    except Exception:  # older jax without pipeline_mode kwarg
        return pl.BlockSpec(shape, _w_idx)


# ---------------------------------------------------------------------------
# Pallas kernel: the full per-node infer_() compute path (root / nohier branch)
# ---------------------------------------------------------------------------
def _latent_node_kernel(
    xin_ref,        # [TB, Kin_pad] packed per-row inputs (f32)
    mem_ref,        # [TB, S, Hm]   encoder states (mxu dtype, bf16 by default)
    wq_ref,         # [Hq, Hm]      attention bilinear
    wf2f_ref,       # [Hq, F]       frame_to_frame head
    wmu_ref,        # [Hm, F]
    bmu_ref,        # [1, F]
    wlv_ref,        # [Hm, F]
    blv_ref,        # [1, F]
    wlf_ref,        # [F, F]        latent_to_frame (pre-transposed)
    blf_ref,        # [1, F]
    emb_ref,        # [F, D]        embeddings.weight
    out_ref,        # [TB, Kout_pad]
    *, Hq, F,
):
    f32 = jnp.float32
    TB, S, Hm = mem_ref.shape
    D = emb_ref.shape[-1]
    wd = wq_ref.dtype                      # MXU operand dtype

    # ---- unpack the packed per-row slab (static slices, contiguous layout) ----
    q        = xin_ref[:, 0:Hq]
    template = xin_ref[:, Hq:Hq + F]
    onehot   = xin_ref[:, Hq + F:Hq + 2 * F]
    eps      = xin_ref[:, Hq + 2 * F:Hq + 3 * F]
    gnoise   = xin_ref[:, Hq + 3 * F:Hq + 4 * F]
    sc0 = Hq + 4 * F
    lens_f   = xin_ref[:, sc0:sc0 + 1]
    lo       = xin_ref[:, sc0 + 1:sc0 + 2]
    ubern    = xin_ref[:, sc0 + 2:sc0 + 3]

    # ---- q-side matmuls (MXU, bf16 operands, f32 accumulation) ----------------
    q_c = q.astype(wd)
    e = jnp.dot(q_c, wq_ref[...], preferred_element_type=f32)             # [TB,Hm]
    f2f_logits = jnp.dot(q_c, wf2f_ref[...], preferred_element_type=f32)  # [TB,F]

    # ---- attention scores on the VPU (broadcast-mul + cross-lane reduce) ------
    mem = mem_ref[...]
    scores = jnp.sum(e[:, None, :] * mem.astype(f32), axis=-1)            # [TB,S]

    # ---- masked softmax over the sequence (mask built from lengths) -----------
    pos = jax.lax.broadcasted_iota(jnp.int32, scores.shape, 1)
    mask = pos < lens_f.astype(jnp.int32)
    masked = jnp.where(mask, scores, jnp.full_like(scores, -1e30))
    smax = jnp.max(masked, axis=-1, keepdims=True)
    sexp = jnp.exp(masked - smax)
    attn = sexp * pl.reciprocal(jnp.sum(sexp, axis=-1, keepdims=True),
                                approx=True)                              # [TB,S]

    # ---- context (VPU multiply + sublane reduce over S) -----------------------
    ctx = jnp.sum(attn[:, :, None] * mem.astype(f32), axis=1)             # [TB,Hm]

    # ---- mu / logvar heads -----------------------------------------------------
    ctx_c = ctx.astype(wd)
    mu = jnp.dot(ctx_c, wmu_ref[...], preferred_element_type=f32) + bmu_ref[...]
    logvar = jnp.dot(ctx_c, wlv_ref[...], preferred_element_type=f32) + blv_ref[...]

    # ---- reparameterize + KL (std*std reuses exp: one EUP pass fewer) ---------
    std = jnp.exp(0.5 * logvar)
    var = std * std                                   # == exp(logvar)
    z = mu + eps * std                                # [TB,F]
    zkl = jnp.sum(0.5 * (mu * mu + var - logvar - 1.0),
                  axis=-1, keepdims=True)             # [TB,1]

    # ---- latent_to_frame linear + template -------------------------------------
    vp = (jnp.dot(z.astype(wd), wlf_ref[...], preferred_element_type=f32)
          + blf_ref[...] + template)                  # [TB,F]

    # ---- lambda / bernoulli gating (lamb_coeff == 1.0 -> exact, no divide) -----
    r = 1.0 - 0.5 * lo                                # 1/(l_o + 1)
    pd = 0.5 * lo                                     # 1 - r
    bern = (ubern < r).astype(f32)

    # ---- softmax / log-softmax over frames (exact division: feeds logs) --------
    vm = jnp.max(vp, axis=-1, keepdims=True)
    ev = jnp.exp(vp - vm)
    denom = jnp.sum(ev, axis=-1, keepdims=True)
    softm = ev / denom
    logsm = (vp - vm) - jnp.log(denom)

    fclass = pd * logsm * onehot
    revised = r * softm + pd * onehot
    rev_ent = jnp.sum(revised * jnp.log(revised + 1e-10), axis=-1, keepdims=True)
    prop_ent = jnp.sum(softm * logsm, axis=-1, keepdims=True)   # reuse logsm

    # ---- gumbel softmax (tau = 0.5) --------------------------------------------
    gl = (vp + gnoise) * 2.0
    gm = jnp.max(gl, axis=-1, keepdims=True)
    ge = jnp.exp(gl - gm)
    gsoft = ge * pl.reciprocal(jnp.sum(ge, axis=-1, keepdims=True), approx=True)
    gsamp = bern * gsoft + (1.0 - bern) * onehot

    # ---- value = gumbel_samples @ embeddings ------------------------------------
    value = jnp.dot(gsamp.astype(wd), emb_ref[...], preferred_element_type=f32)

    # ---- frame_to_frame probs (attention aux head) -------------------------------
    fm = jnp.max(f2f_logits, axis=-1, keepdims=True)
    fe = jnp.exp(f2f_logits - fm)
    f2f = fe * pl.reciprocal(jnp.sum(fe, axis=-1, keepdims=True), approx=True)

    # ---- direct per-piece stores into the lane-dense output slab -----------------
    out_ref[:, 0:F] = gsamp
    out_ref[:, F:2 * F] = f2f
    out_ref[:, 2 * F:3 * F] = fclass
    out_ref[:, 3 * F:4 * F] = gsoft
    out_ref[:, 4 * F:4 * F + D] = value
    base = 4 * F + D
    out_ref[:, base:base + S] = attn
    base += S
    out_ref[:, base:base + 1] = prop_ent
    out_ref[:, base + 1:base + 2] = rev_ent
    out_ref[:, base + 2:base + 3] = zkl
    used = base + 3
    if used < out_ref.shape[-1]:
        out_ref[:, used:] = jnp.zeros((TB, out_ref.shape[-1] - used), f32)


# ---------------------------------------------------------------------------
# Wrapper: parameter setup, RNG, pallas_call, and the collect() glue
# ---------------------------------------------------------------------------
def init_params(key, num_frames, q_dim, m_dim, emb_dim):
    k = jax.random.split(key, 6)
    F, D = num_frames, emb_dim

    def xav(kk, fan_in, fan_out, shape):
        lim = (6.0 / (fan_in + fan_out)) ** 0.5
        return jax.random.uniform(kk, shape, jnp.float32, -lim, lim)

    wv = xav(k[2], m_dim, 2 * F, (m_dim, 2 * F))          # (mu | logvar) head
    blim = 1.0 / (F ** 0.5)
    return {
        "wq": xav(k[0], q_dim, m_dim, (q_dim, m_dim)),    # attention bilinear
        "wf2f": xav(k[1], q_dim, F, (q_dim, F)),          # frame_to_frame head
        "w_mu": wv[:, :F],
        "w_lv": wv[:, F:],
        "b_mu": jnp.zeros((1, F), jnp.float32),
        "b_lv": jnp.zeros((1, F), jnp.float32),
        "wlf": xav(k[3], F, F, (F, F)),                   # latent_to_frame^T
        "blf": jax.random.uniform(k[4], (1, F), jnp.float32, -blim, blim),
        "emb": xav(k[5], F, D, (F, D)),                   # embeddings.weight
    }


@functools.partial(jax.jit, static_argnames=("obsv_prob", "mxu_dtype"))
def latent_node_forward(obsv_prob, input_memory, input_lens, init_query,
                        f_vals, template_input, params, rng,
                        mxu_dtype=jnp.bfloat16):
    B, S, Hm = input_memory.shape
    Hq = init_query.shape[-1]
    F, D = params["emb"].shape
    mxu_dtype = jnp.dtype(mxu_dtype)

    # ---- packed slab layouts ----------------------------------------------------
    Kin = Hq + 4 * F + 3
    Kin_pad = _round_up(Kin, _LANE)
    Kout = 4 * F + D + S + 3
    Kout_pad = _round_up(Kout, _LANE)
    # TODO(synk): lane-align individual slab pieces when F/D/S grow large.

    # ---- batch tile from a double-buffered per-row VMEM stream budget ------------
    row_bytes = 2 * (S * Hm * mxu_dtype.itemsize + 4 * Kin_pad + 4 * Kout_pad)
    TB = _pick_batch_tile(B, row_bytes)
    nb = -(-B // TB)
    B_pad = nb * TB

    if B_pad != B:
        pn = B_pad - B
        row_pad = lambda x: jnp.pad(x, ((0, pn),) + ((0, 0),) * (x.ndim - 1))
        input_memory = row_pad(input_memory)
        init_query = row_pad(init_query)
        template_input = row_pad(template_input)
        f_vals = row_pad(f_vals)
        input_lens = jnp.pad(input_lens, (0, pn), constant_values=1)

    # ---- glue: flags, one-hot, randomness ----------------------------------------
    lens_f = jnp.maximum(input_lens.astype(jnp.int32), 1).astype(jnp.float32)[:, None]
    f_root = f_vals[:, 0]
    lo = (f_root > 0).astype(jnp.float32)[:, None]                 # [B_pad, 1]
    lc = (f_root > 2).astype(jnp.float32)[:, None]                 # [B_pad, 1]
    onehot = jax.nn.one_hot(f_root, F, dtype=jnp.float32)          # [B_pad, F]

    k_eps, k_g, k_b = jax.random.split(rng, 3)
    eps = jax.random.normal(k_eps, (B_pad, F), jnp.float32)
    u_g = jax.random.uniform(k_g, (B_pad, F), jnp.float32, minval=1e-10, maxval=1.0)
    gnoise = -jnp.log(-jnp.log(u_g))
    ubern = jax.random.uniform(k_b, (B_pad, 1), jnp.float32)

    # one lane-dense packed input slab (1 DMA stream instead of ~8)
    xin = jnp.concatenate(
        [init_query, template_input, onehot, eps, gnoise, lens_f, lo, ubern],
        axis=-1)
    if Kin_pad != Kin:
        xin = jnp.pad(xin, ((0, 0), (0, Kin_pad - Kin)))

    # bf16 for the dominant mem stream + MXU weight operands (f32 accumulation)
    mem = input_memory.astype(mxu_dtype)
    wq = params["wq"].astype(mxu_dtype)
    wf2f = params["wf2f"].astype(mxu_dtype)
    wmu = params["w_mu"].astype(mxu_dtype)
    wlv = params["w_lv"].astype(mxu_dtype)
    wlf = params["wlf"].astype(mxu_dtype)
    emb = params["emb"].astype(mxu_dtype)

    b2 = lambda i: (i, 0)
    b3 = lambda i: (i, 0, 0)
    in_specs = [
        pl.BlockSpec((TB, Kin_pad), b2),        # packed per-row inputs
        pl.BlockSpec((TB, S, Hm), b3),          # encoder memory
        _weight_spec((Hq, Hm)),                 # wq
        _weight_spec((Hq, F)),                  # wf2f
        _weight_spec((Hm, F)),                  # w_mu
        _weight_spec((1, F)),                   # b_mu
        _weight_spec((Hm, F)),                  # w_lv
        _weight_spec((1, F)),                   # b_lv
        _weight_spec((F, F)),                   # wlf
        _weight_spec((1, F)),                   # blf
        _weight_spec((F, D)),                   # emb
    ]
    out_spec = pl.BlockSpec((TB, Kout_pad), b2)

    kernel = pl.pallas_call(
        functools.partial(_latent_node_kernel, Hq=Hq, F=F),
        out_shape=jax.ShapeDtypeStruct((B_pad, Kout_pad), jnp.float32),
        grid_spec=pltpu.PrefetchScalarGridSpec(
            num_scalar_prefetch=0, grid=(nb,),
            in_specs=in_specs, out_specs=out_spec),
        compiler_params=pltpu.CompilerParams(
            dimension_semantics=("parallel",),
            vmem_limit_bytes=48 * 1024 * 1024),
    )
    slab = kernel(xin, mem, wq, wf2f, wmu, params["b_mu"], wlv, params["b_lv"],
                  wlf, params["blf"], emb)

    # ---- unpack the slab (drop batch padding) -------------------------------------
    slab = slab[:B]
    lo, lc = lo[:B], lc[:B]
    gsamp = slab[:, 0:F]
    f2f = slab[:, F:2 * F]
    fclass = slab[:, 2 * F:3 * F]
    prop_gumb = slab[:, 3 * F:4 * F]
    value = slab[:, 4 * F:4 * F + D]
    attn = slab[:, 4 * F + D:4 * F + D + S]
    base = 4 * F + D + S
    prop_ent = slab[:, base]
    rev_ent = slab[:, base + 1]
    zkl_sum = slab[:, base + 2]

    # ---- obsv_prob-dependent coefficients + PyTorch broadcasting semantics ---------
    if obsv_prob >= 0.5:
        rev_c, prop_c = 0.3, 0.3
    else:
        rev_c, prop_c = 0.1, 0.1
    kl_coeff = lc * 1e-06                                          # [B,1]

    # NOTE: (1 - 2*l_o)[B,1] * ent[B] -> [B,B] replicates the torch broadcast
    # exactly as the reference module computes it (kept for fidelity).
    prop_entropy = prop_c * (1.0 - 2.0 * lo) * prop_ent[None, :]   # [B,B]
    revised_entropy = rev_c * rev_ent                              # [B]
    z_kl = kl_coeff * zkl_sum[None, :]                             # [B,B]
    frame_classifier = 1.0 * fclass

    # ---- collect() on a single root node -> stacks of length 1 ---------------------
    collected = gsamp[:, None, :]                 # [B,1,F]
    embs = value[:, None, :]                      # [B,1,D]
    prop_entropy_s = prop_entropy[..., None]      # [B,B,1]
    revised_entropy_s = revised_entropy[:, None]  # [B,1]
    frames_to_frames = f2f[:, None, :]            # [B,1,F]
    frame_classifier_s = frame_classifier[:, None, :]
    prop_gumb_s = prop_gumb[:, None, :]
    scores = attn[:, None, :]                     # [B,1,S]
    z_kl_s = z_kl[:, None, :]                     # [B,1,B]
    diffs = ((jnp.zeros((1, 1), jnp.float32), jnp.zeros((1, 1), jnp.float32)),)

    return (collected, diffs, embs, prop_entropy_s, revised_entropy_s,
            frames_to_frames, frame_classifier_s, prop_gumb_s, scores, z_kl_s)


# ---------------------------------------------------------------------------
if __name__ == "__main__":
    B, S = 16, 8          # batch (two grid steps of 8), seq_len
    H = 32                # query / memory hidden dim
    F = 16                # num_Frames
    D = 32                # latent embedding dim
    NC = 4                # num_clauses

    root = jax.random.PRNGKey(0)
    kp, km, kq, kf, kl, kt, kr = jax.random.split(root, 7)

    params = init_params(kp, num_frames=F, q_dim=H, m_dim=H, emb_dim=D)

    input_memory = jax.random.normal(km, (B, S, H), jnp.float32)
    init_query = jax.random.normal(kq, (B, H), jnp.float32)
    input_lens = jax.random.randint(kl, (B,), 1, S + 1)
    f_vals = jax.random.randint(kf, (B, NC), 0, F)
    template_input = jax.random.normal(kt, (B, F), jnp.float32)

    outs = latent_node_forward(0.7, input_memory, input_lens, init_query,
                               f_vals, template_input, params, kr)
    jax.block_until_ready(outs)

    (collected, diffs, embs, prop_entropy, revised_entropy,
     frames_to_frames, frame_classifier, prop_gumb, scores, z_kl) = outs
    assert collected.shape == (B, 1, F)
    assert embs.shape == (B, 1, D)
    assert prop_entropy.shape == (B, B, 1)
    assert revised_entropy.shape == (B, 1)
    assert frames_to_frames.shape == (B, 1, F)
    assert frame_classifier.shape == (B, 1, F)
    assert prop_gumb.shape == (B, 1, F)
    assert scores.shape == (B, 1, S)
    assert z_kl.shape == (B, 1, B)
    print("KERNEL_OK")
</pallas_src>

<mosaic_0001>
module attributes {stable_mosaic.version = 11 : i64} {
  func.func @_latent_node_kernel(%arg0: i32, %arg1: memref<8x128xf32, #tpu.memory_space<vmem>>, %arg2: memref<8x8x32xbf16, #tpu.memory_space<vmem>>, %arg3: memref<32x32xbf16, #tpu.memory_space<vmem>>, %arg4: memref<32x16xbf16, #tpu.memory_space<vmem>>, %arg5: memref<32x16xbf16, #tpu.memory_space<vmem>>, %arg6: memref<1x16xf32, #tpu.memory_space<vmem>>, %arg7: memref<32x16xbf16, #tpu.memory_space<vmem>>, %arg8: memref<1x16xf32, #tpu.memory_space<vmem>>, %arg9: memref<16x16xbf16, #tpu.memory_space<vmem>>, %arg10: memref<1x16xf32, #tpu.memory_space<vmem>>, %arg11: memref<16x32xbf16, #tpu.memory_space<vmem>>, %arg12: memref<8x128xf32, #tpu.memory_space<vmem>>) attributes {dimension_semantics = [#tpu.dimension_semantics<parallel>], iteration_bounds = array<i64: 2>, scalar_prefetch = 0 : i64, scratch_operands = 0 : i64, tpu.core_type = #tpu.core_type<tc>, window_params = [{transform_indices = @transform_0, window_bounds = array<i64: 8, 128>}, {transform_indices = @transform_1, window_bounds = array<i64: 8, 8, 32>}, {pipeline_mode = #tpu.pipeline_mode<synchronous>, transform_indices = @transform_2, window_bounds = array<i64: 32, 32>}, {pipeline_mode = #tpu.pipeline_mode<synchronous>, transform_indices = @transform_3, window_bounds = array<i64: 32, 16>}, {pipeline_mode = #tpu.pipeline_mode<synchronous>, transform_indices = @transform_4, window_bounds = array<i64: 32, 16>}, {pipeline_mode = #tpu.pipeline_mode<synchronous>, transform_indices = @transform_5, window_bounds = array<i64: 1, 16>}, {pipeline_mode = #tpu.pipeline_mode<synchronous>, transform_indices = @transform_6, window_bounds = array<i64: 32, 16>}, {pipeline_mode = #tpu.pipeline_mode<synchronous>, transform_indices = @transform_7, window_bounds = array<i64: 1, 16>}, {pipeline_mode = #tpu.pipeline_mode<synchronous>, transform_indices = @transform_8, window_bounds = array<i64: 16, 16>}, {pipeline_mode = #tpu.pipeline_mode<synchronous>, transform_indices = @transform_9, window_bounds = array<i64: 1, 16>}, {pipeline_mode = #tpu.pipeline_mode<synchronous>, transform_indices = @transform_10, window_bounds = array<i64: 16, 32>}, {transform_indices = @transform_11, window_bounds = array<i64: 8, 128>}]} {
    %c0 = arith.constant 0 : index
    %c0_0 = arith.constant 0 : index
    %0 = vector.load %arg1[%c0, %c0_0] : memref<8x128xf32, #tpu.memory_space<vmem>>, vector<8x32xf32>
    %c0_1 = arith.constant 0 : index
    %c32 = arith.constant 32 : index
    %1 = vector.load %arg1[%c0_1, %c32] : memref<8x128xf32, #tpu.memory_space<vmem>>, vector<8x16xf32>
    %c0_2 = arith.constant 0 : index
    %c48 = arith.constant 48 : index
    %2 = vector.load %arg1[%c0_2, %c48] : memref<8x128xf32, #tpu.memory_space<vmem>>, vector<8x16xf32>
    %c0_3 = arith.constant 0 : index
    %c64 = arith.constant 64 : index
    %3 = vector.load %arg1[%c0_3, %c64] : memref<8x128xf32, #tpu.memory_space<vmem>>, vector<8x16xf32>
    %c0_4 = arith.constant 0 : index
    %c80 = arith.constant 80 : index
    %4 = vector.load %arg1[%c0_4, %c80] : memref<8x128xf32, #tpu.memory_space<vmem>>, vector<8x16xf32>
    %c0_5 = arith.constant 0 : index
    %c96 = arith.constant 96 : index
    %5 = vector.load %arg1[%c0_5, %c96] : memref<8x128xf32, #tpu.memory_space<vmem>>, vector<8x1xf32>
    %c0_6 = arith.constant 0 : index
    %c97 = arith.constant 97 : index
    %6 = vector.load %arg1[%c0_6, %c97] : memref<8x128xf32, #tpu.memory_space<vmem>>, vector<8x1xf32>
    %c0_7 = arith.constant 0 : index
    %c98 = arith.constant 98 : index
    %7 = vector.load %arg1[%c0_7, %c98] : memref<8x128xf32, #tpu.memory_space<vmem>>, vector<8x1xf32>
    %8 = arith.truncf %0 : vector<8x32xf32> to vector<8x32xbf16>
    %c0_8 = arith.constant 0 : index
    %c0_9 = arith.constant 0 : index
    %9 = vector.load %arg3[%c0_8, %c0_9] : memref<32x32xbf16, #tpu.memory_space<vmem>>, vector<32x32xbf16>
    %cst = arith.constant dense<0.000000e+00> : vector<8x32xf32>
    %10 = tpu.matmul %8, %9, %cst {dimension_numbers = #tpu.dot_dimension_numbers<[1], [0], [0], [1], [0, 0, 1, 1], [], []>} : vector<8x32xbf16>, vector<32x32xbf16>, vector<8x32xf32> -> vector<8x32xf32>
    %c0_10 = arith.constant 0 : index
    %c0_11 = arith.constant 0 : index
    %11 = vector.load %arg4[%c0_10, %c0_11] : memref<32x16xbf16, #tpu.memory_space<vmem>>, vector<32x16xbf16>
    %cst_12 = arith.constant dense<0.000000e+00> : vector<8x16xf32>
    %12 = tpu.matmul %8, %11, %cst_12 {dimension_numbers = #tpu.dot_dimension_numbers<[1], [0], [0], [1], [0, 0, 1, 1], [], []>} : vector<8x32xbf16>, vector<32x16xbf16>, vector<8x16xf32> -> vector<8x16xf32>
    %c0_13 = arith.constant 0 : index
    %c0_14 = arith.constant 0 : index
    %c0_15 = arith.constant 0 : index
    %13 = vector.load %arg2[%c0_13, %c0_14, %c0_15] : memref<8x8x32xbf16, #tpu.memory_space<vmem>>, vector<8x8x32xbf16>
    %14 = vector.shape_cast %10 : vector<8x32xf32> to vector<8x1x32xf32>
    %15 = arith.extf %13 : vector<8x8x32xbf16> to vector<8x8x32xf32>
    %16 = vector.broadcast %14 : vector<8x1x32xf32> to vector<8x8x32xf32>
    %17 = arith.mulf %16, %15 : vector<8x8x32xf32>
    %cst_16 = arith.constant dense<0.000000e+00> : vector<8x8xf32>
    %18 = vector.multi_reduction <add>, %17, %cst_16 [2] : vector<8x8x32xf32> to vector<8x8xf32>
    %19 = tpu.iota {dimensions = array<i32: 1>} : vector<8x8xi32>
    %20 = arith.fptosi %5 : vector<8x1xf32> to vector<8x1xi32>
    %21 = vector.broadcast %20 : vector<8x1xi32> to vector<8x8xi32>
    %22 = arith.cmpi slt, %19, %21 : vector<8x8xi32>
    %cst_17 = arith.constant -1.000000e+30 : f32
    %23 = vector.broadcast %cst_17 : f32 to vector<8x8xf32>
    %24 = arith.select %22, %18, %23 : vector<8x8xi1>, vector<8x8xf32>
    %cst_18 = arith.constant dense<0xFF800000> : vector<8xf32>
    %25 = vector.multi_reduction <maximumf>, %24, %cst_18 [1] : vector<8x8xf32> to vector<8xf32>
    %26 = vector.shape_cast %25 : vector<8xf32> to vector<8x1xf32>
    %27 = vector.broadcast %26 : vector<8x1xf32> to vector<8x8xf32>
    %28 = arith.subf %24, %27 : vector<8x8xf32>
    %29 = math.exp %28 : vector<8x8xf32>
    %cst_19 = arith.constant dense<0.000000e+00> : vector<8xf32>
    %30 = vector.multi_reduction <add>, %29, %cst_19 [1] : vector<8x8xf32> to vector<8xf32>
    %31 = vector.shape_cast %30 : vector<8xf32> to vector<8x1xf32>
    %32 = tpu.reciprocal %31 {approx = true} : vector<8x1xf32> -> vector<8x1xf32>
    %33 = vector.broadcast %32 : vector<8x1xf32> to vector<8x8xf32>
    %34 = arith.mulf %29, %33 : vector<8x8xf32>
    %35 = vector.shape_cast %34 : vector<8x8xf32> to vector<8x8x1xf32>
    %36 = arith.extf %13 : vector<8x8x32xbf16> to vector<8x8x32xf32>
    %37 = vector.broadcast %35 : vector<8x8x1xf32> to vector<8x8x32xf32>
    %38 = arith.mulf %37, %36 : vector<8x8x32xf32>
    %cst_20 = arith.constant dense<0.000000e+00> : vector<8x32xf32>
    %39 = vector.multi_reduction <add>, %38, %cst_20 [1] : vector<8x8x32xf32> to vector<8x32xf32>
    %40 = arith.truncf %39 : vector<8x32xf32> to vector<8x32xbf16>
    %c0_21 = arith.constant 0 : index
    %c0_22 = arith.constant 0 : index
    %41 = vector.load %arg5[%c0_21, %c0_22] : memref<32x16xbf16, #tpu.memory_space<vmem>>, vector<32x16xbf16>
    %cst_23 = arith.constant dense<0.000000e+00> : vector<8x16xf32>
    %42 = tpu.matmul %40, %41, %cst_23 {dimension_numbers = #tpu.dot_dimension_numbers<[1], [0], [0], [1], [0, 0, 1, 1], [], []>} : vector<8x32xbf16>, vector<32x16xbf16>, vector<8x16xf32> -> vector<8x16xf32>
    %c0_24 = arith.constant 0 : index
    %c0_25 = arith.constant 0 : index
    %43 = vector.load %arg6[%c0_24, %c0_25] : memref<1x16xf32, #tpu.memory_space<vmem>>, vector<1x16xf32>
    %44 = vector.broadcast %43 : vector<1x16xf32> to vector<8x16xf32>
    %45 = arith.addf %42, %44 : vector<8x16xf32>
    %c0_26 = arith.constant 0 : index
    %c0_27 = arith.constant 0 : index
    %46 = vector.load %arg7[%c0_26, %c0_27] : memref<32x16xbf16, #tpu.memory_space<vmem>>, vector<32x16xbf16>
    %cst_28 = arith.constant dense<0.000000e+00> : vector<8x16xf32>
    %47 = tpu.matmul %40, %46, %cst_28 {dimension_numbers = #tpu.dot_dimension_numbers<[1], [0], [0], [1], [0, 0, 1, 1], [], []>} : vector<8x32xbf16>, vector<32x16xbf16>, vector<8x16xf32> -> vector<8x16xf32>
    %c0_29 = arith.constant 0 : index
    %c0_30 = arith.constant 0 : index
    %48 = vector.load %arg8[%c0_29, %c0_30] : memref<1x16xf32, #tpu.memory_space<vmem>>, vector<1x16xf32>
    %49 = vector.broadcast %48 : vector<1x16xf32> to vector<8x16xf32>
    %50 = arith.addf %47, %49 : vector<8x16xf32>
    %cst_31 = arith.constant 5.000000e-01 : f32
    %51 = vector.broadcast %cst_31 : f32 to vector<8x16xf32>
    %52 = arith.mulf %51, %50 : vector<8x16xf32>
    %53 = math.exp %52 : vector<8x16xf32>
    %54 = arith.mulf %53, %53 : vector<8x16xf32>
    %55 = arith.mulf %3, %53 : vector<8x16xf32>
    %56 = arith.addf %45, %55 : vector<8x16xf32>
    %57 = arith.mulf %45, %45 : vector<8x16xf32>
    %58 = arith.addf %57, %54 : vector<8x16xf32>
    %59 = arith.subf %58, %50 : vector<8x16xf32>
    %cst_32 = arith.constant 1.000000e+00 : f32
    %60 = vector.broadcast %cst_32 : f32 to vector<8x16xf32>
    %61 = arith.subf %59, %60 : vector<8x16xf32>
    %cst_33 = arith.constant 5.000000e-01 : f32
    %62 = vector.broadcast %cst_33 : f32 to vector<8x16xf32>
    %63 = arith.mulf %62, %61 : vector<8x16xf32>
    %cst_34 = arith.constant dense<0.000000e+00> : vector<8xf32>
    %64 = vector.multi_reduction <add>, %63, %cst_34 [1] : vector<8x16xf32> to vector<8xf32>
    %65 = vector.shape_cast %64 : vector<8xf32> to vector<8x1xf32>
    %66 = arith.truncf %56 : vector<8x16xf32> to vector<8x16xbf16>
    %c0_35 = arith.constant 0 : index
    %c0_36 = arith.constant 0 : index
    %67 = vector.load %arg9[%c0_35, %c0_36] : memref<16x16xbf16, #tpu.memory_space<vmem>>, vector<16x16xbf16>
    %cst_37 = arith.constant dense<0.000000e+00> : vector<8x16xf32>
    %68 = tpu.matmul %66, %67, %cst_37 {dimension_numbers = #tpu.dot_dimension_numbers<[1], [0], [0], [1], [0, 0, 1, 1], [], []>} : vector<8x16xbf16>, vector<16x16xbf16>, vector<8x16xf32> -> vector<8x16xf32>
    %c0_38 = arith.constant 0 : index
    %c0_39 = arith.constant 0 : index
    %69 = vector.load %arg10[%c0_38, %c0_39] : memref<1x16xf32, #tpu.memory_space<vmem>>, vector<1x16xf32>
    %70 = vector.broadcast %69 : vector<1x16xf32> to vector<8x16xf32>
    %71 = arith.addf %68, %70 : vector<8x16xf32>
    %72 = arith.addf %71, %1 : vector<8x16xf32>
    %cst_40 = arith.constant 5.000000e-01 : f32
    %73 = vector.broadcast %cst_40 : f32 to vector<8x1xf32>
    %74 = arith.mulf %73, %6 : vector<8x1xf32>
    %cst_41 = arith.constant 1.000000e+00 : f32
    %75 = vector.broadcast %cst_41 : f32 to vector<8x1xf32>
    %76 = arith.subf %75, %74 : vector<8x1xf32>
    %cst_42 = arith.constant 5.000000e-01 : f32
    %77 = vector.broadcast %cst_42 : f32 to vector<8x1xf32>
    %78 = arith.mulf %77, %6 : vector<8x1xf32>
    %79 = arith.cmpf olt, %7, %76 : vector<8x1xf32>
    %80 = arith.extui %79 : vector<8x1xi1> to vector<8x1xi32>
    %81 = arith.sitofp %80 : vector<8x1xi32> to vector<8x1xf32>
    %cst_43 = arith.constant dense<0xFF800000> : vector<8xf32>
    %82 = vector.multi_reduction <maximumf>, %72, %cst_43 [1] : vector<8x16xf32> to vector<8xf32>
    %83 = vector.shape_cast %82 : vector<8xf32> to vector<8x1xf32>
    %84 = vector.broadcast %83 : vector<8x1xf32> to vector<8x16xf32>
    %85 = arith.subf %72, %84 : vector<8x16xf32>
    %86 = math.exp %85 : vector<8x16xf32>
    %cst_44 = arith.constant dense<0.000000e+00> : vector<8xf32>
    %87 = vector.multi_reduction <add>, %86, %cst_44 [1] : vector<8x16xf32> to vector<8xf32>
    %88 = vector.shape_cast %87 : vector<8xf32> to vector<8x1xf32>
    %89 = vector.broadcast %88 : vector<8x1xf32> to vector<8x16xf32>
    %90 = arith.divf %86, %89 : vector<8x16xf32>
    %91 = vector.broadcast %83 : vector<8x1xf32> to vector<8x16xf32>
    %92 = arith.subf %72, %91 : vector<8x16xf32>
    %93 = math.log %88 : vector<8x1xf32>
    %94 = vector.broadcast %93 : vector<8x1xf32> to vector<8x16xf32>
    %95 = arith.subf %92, %94 : vector<8x16xf32>
    %96 = vector.broadcast %78 : vector<8x1xf32> to vector<8x16xf32>
    %97 = arith.mulf %96, %95 : vector<8x16xf32>
    %98 = arith.mulf %97, %2 : vector<8x16xf32>
    %99 = vector.broadcast %76 : vector<8x1xf32> to vector<8x16xf32>
    %100 = arith.mulf %99, %90 : vector<8x16xf32>
    %101 = vector.broadcast %78 : vector<8x1xf32> to vector<8x16xf32>
    %102 = arith.mulf %101, %2 : vector<8x16xf32>
    %103 = arith.addf %100, %102 : vector<8x16xf32>
    %cst_45 = arith.constant 1.000000e-10 : f32
    %104 = vector.broadcast %cst_45 : f32 to vector<8x16xf32>
    %105 = arith.addf %103, %104 : vector<8x16xf32>
    %106 = math.log %105 : vector<8x16xf32>
    %107 = arith.mulf %103, %106 : vector<8x16xf32>
    %cst_46 = arith.constant dense<0.000000e+00> : vector<8xf32>
    %108 = vector.multi_reduction <add>, %107, %cst_46 [1] : vector<8x16xf32> to vector<8xf32>
    %109 = vector.shape_cast %108 : vector<8xf32> to vector<8x1xf32>
    %110 = arith.mulf %90, %95 : vector<8x16xf32>
    %cst_47 = arith.constant dense<0.000000e+00> : vector<8xf32>
    %111 = vector.multi_reduction <add>, %110, %cst_47 [1] : vector<8x16xf32> to vector<8xf32>
    %112 = vector.shape_cast %111 : vector<8xf32> to vector<8x1xf32>
    %113 = arith.addf %72, %4 : vector<8x16xf32>
    %cst_48 = arith.constant 2.000000e+00 : f32
    %114 = vector.broadcast %cst_48 : f32 to vector<8x16xf32>
    %115 = arith.mulf %113, %114 : vector<8x16xf32>
    %cst_49 = arith.constant dense<0xFF800000> : vector<8xf32>
    %116 = vector.multi_reduction <maximumf>, %115, %cst_49 [1] : vector<8x16xf32> to vector<8xf32>
    %117 = vector.shape_cast %116 : vector<8xf32> to vector<8x1xf32>
    %118 = vector.broadcast %117 : vector<8x1xf32> to vector<8x16xf32>
    %119 = arith.subf %115, %118 : vector<8x16xf32>
    %120 = math.exp %119 : vector<8x16xf32>
    %cst_50 = arith.constant dense<0.000000e+00> : vector<8xf32>
    %121 = vector.multi_reduction <add>, %120, %cst_50 [1] : vector<8x16xf32> to vector<8xf32>
    %122 = vector.shape_cast %121 : vector<8xf32> to vector<8x1xf32>
    %123 = tpu.reciprocal %122 {approx = true} : vector<8x1xf32> -> vector<8x1xf32>
    %124 = vector.broadcast %123 : vector<8x1xf32> to vector<8x16xf32>
    %125 = arith.mulf %120, %124 : vector<8x16xf32>
    %126 = vector.broadcast %81 : vector<8x1xf32> to vector<8x16xf32>
    %127 = arith.mulf %126, %125 : vector<8x16xf32>
    %cst_51 = arith.constant 1.000000e+00 : f32
    %128 = vector.broadcast %cst_51 : f32 to vector<8x1xf32>
    %129 = arith.subf %128, %81 : vector<8x1xf32>
    %130 = vector.broadcast %129 : vector<8x1xf32> to vector<8x16xf32>
    %131 = arith.mulf %130, %2 : vector<8x16xf32>
    %132 = arith.addf %127, %131 : vector<8x16xf32>
    %133 = arith.truncf %132 : vector<8x16xf32> to vector<8x16xbf16>
    %c0_52 = arith.constant 0 : index
    %c0_53 = arith.constant 0 : index
    %134 = vector.load %arg11[%c0_52, %c0_53] : memref<16x32xbf16, #tpu.memory_space<vmem>>, vector<16x32xbf16>
    %cst_54 = arith.constant dense<0.000000e+00> : vector<8x32xf32>
    %135 = tpu.matmul %133, %134, %cst_54 {dimension_numbers = #tpu.dot_dimension_numbers<[1], [0], [0], [1], [0, 0, 1, 1], [], []>} : vector<8x16xbf16>, vector<16x32xbf16>, vector<8x32xf32> -> vector<8x32xf32>
    %cst_55 = arith.constant dense<0xFF800000> : vector<8xf32>
    %136 = vector.multi_reduction <maximumf>, %12, %cst_55 [1] : vector<8x16xf32> to vector<8xf32>
    %137 = vector.shape_cast %136 : vector<8xf32> to vector<8x1xf32>
    %138 = vector.broadcast %137 : vector<8x1xf32> to vector<8x16xf32>
    %139 = arith.subf %12, %138 : vector<8x16xf32>
    %140 = math.exp %139 : vector<8x16xf32>
    %cst_56 = arith.constant dense<0.000000e+00> : vector<8xf32>
    %141 = vector.multi_reduction <add>, %140, %cst_56 [1] : vector<8x16xf32> to vector<8xf32>
    %142 = vector.shape_cast %141 : vector<8xf32> to vector<8x1xf32>
    %143 = tpu.reciprocal %142 {approx = true} : vector<8x1xf32> -> vector<8x1xf32>
    %144 = vector.broadcast %143 : vector<8x1xf32> to vector<8x16xf32>
    %145 = arith.mulf %140, %144 : vector<8x16xf32>
    %c0_57 = arith.constant 0 : index
    %c0_58 = arith.constant 0 : index
    %146 = vector.load %arg12[%c0_57, %c0_58] : memref<8x128xf32, #tpu.memory_space<vmem>>, vector<8x16xf32>
    tpu.vector_store %arg12[%c0_57, %c0_58], %132 {strides = array<i32>} : memref<8x128xf32, #tpu.memory_space<vmem>>, vector<8x16xf32>,
    %c0_59 = arith.constant 0 : index
    %c16 = arith.constant 16 : index
    %147 = vector.load %arg12[%c0_59, %c16] : memref<8x128xf32, #tpu.memory_space<vmem>>, vector<8x16xf32>
    tpu.vector_store %arg12[%c0_59, %c16], %145 {strides = array<i32>} : memref<8x128xf32, #tpu.memory_space<vmem>>, vector<8x16xf32>,
    %c0_60 = arith.constant 0 : index
    %c32_61 = arith.constant 32 : index
    %148 = vector.load %arg12[%c0_60, %c32_61] : memref<8x128xf32, #tpu.memory_space<vmem>>, vector<8x16xf32>
    tpu.vector_store %arg12[%c0_60, %c32_61], %98 {strides = array<i32>} : memref<8x128xf32, #tpu.memory_space<vmem>>, vector<8x16xf32>,
    %c0_62 = arith.constant 0 : index
    %c48_63 = arith.constant 48 : index
    %149 = vector.load %arg12[%c0_62, %c48_63] : memref<8x128xf32, #tpu.memory_space<vmem>>, vector<8x16xf32>
    tpu.vector_store %arg12[%c0_62, %c48_63], %125 {strides = array<i32>} : memref<8x128xf32, #tpu.memory_space<vmem>>, vector<8x16xf32>,
    %c0_64 = arith.constant 0 : index
    %c64_65 = arith.constant 64 : index
    %150 = vector.load %arg12[%c0_64, %c64_65] : memref<8x128xf32, #tpu.memory_space<vmem>>, vector<8x32xf32>
    tpu.vector_store %arg12[%c0_64, %c64_65], %135 {strides = array<i32>} : memref<8x128xf32, #tpu.memory_space<vmem>>, vector<8x32xf32>,
    %c0_66 = arith.constant 0 : index
    %c96_67 = arith.constant 96 : index
    %151 = vector.load %arg12[%c0_66, %c96_67] : memref<8x128xf32, #tpu.memory_space<vmem>>, vector<8x8xf32>
    tpu.vector_store %arg12[%c0_66, %c96_67], %34 {strides = array<i32>} : memref<8x128xf32, #tpu.memory_space<vmem>>, vector<8x8xf32>,
    %c0_68 = arith.constant 0 : index
    %c104 = arith.constant 104 : index
    %152 = vector.load %arg12[%c0_68, %c104] : memref<8x128xf32, #tpu.memory_space<vmem>>, vector<8x1xf32>
    tpu.vector_store %arg12[%c0_68, %c104], %112 {strides = array<i32>} : memref<8x128xf32, #tpu.memory_space<vmem>>, vector<8x1xf32>,
    %c0_69 = arith.constant 0 : index
    %c105 = arith.constant 105 : index
    %153 = vector.load %arg12[%c0_69, %c105] : memref<8x128xf32, #tpu.memory_space<vmem>>, vector<8x1xf32>
    tpu.vector_store %arg12[%c0_69, %c105], %109 {strides = array<i32>} : memref<8x128xf32, #tpu.memory_space<vmem>>, vector<8x1xf32>,
    %c0_70 = arith.constant 0 : index
    %c106 = arith.constant 106 : index
    %154 = vector.load %arg12[%c0_70, %c106] : memref<8x128xf32, #tpu.memory_space<vmem>>, vector<8x1xf32>
    tpu.vector_store %arg12[%c0_70, %c106], %65 {strides = array<i32>} : memref<8x128xf32, #tpu.memory_space<vmem>>, vector<8x1xf32>,
    %cst_71 = arith.constant 0.000000e+00 : f32
    %155 = vector.broadcast %cst_71 : f32 to vector<8x21xf32>
    %c0_72 = arith.constant 0 : index
    %c107 = arith.constant 107 : index
    %156 = vector.load %arg12[%c0_72, %c107] : memref<8x128xf32, #tpu.memory_space<vmem>>, vector<8x21xf32>
    tpu.vector_store %arg12[%c0_72, %c107], %155 {strides = array<i32>} : memref<8x128xf32, #tpu.memory_space<vmem>>, vector<8x21xf32>,
    return
  }
  func.func @transform_0(%arg0: i32) -> (i32, i32) {
    %c0_i32 = arith.constant 0 : i32
    %c0_i32_0 = arith.constant 0 : i32
    return %arg0, %c0_i32 : i32, i32
  }
  func.func @transform_1(%arg0: i32) -> (i32, i32, i32) {
    %c0_i32 = arith.constant 0 : i32
    %c0_i32_0 = arith.constant 0 : i32
    %c0_i32_1 = arith.constant 0 : i32
    return %arg0, %c0_i32, %c0_i32_0 : i32, i32, i32
  }
  func.func @transform_2(%arg0: i32) -> (i32, i32) {
    %c0_i32 = arith.constant 0 : i32
    %c0_i32_0 = arith.constant 0 : i32
    %c0_i32_1 = arith.constant 0 : i32
    return %c0_i32, %c0_i32_0 : i32, i32
  }
  func.func @transform_3(%arg0: i32) -> (i32, i32) {
    %c0_i32 = arith.constant 0 : i32
    %c0_i32_0 = arith.constant 0 : i32
    %c0_i32_1 = arith.constant 0 : i32
    return %c0_i32, %c0_i32_0 : i32, i32
  }
  func.func @transform_4(%arg0: i32) -> (i32, i32) {
    %c0_i32 = arith.constant 0 : i32
    %c0_i32_0 = arith.constant 0 : i32
    %c0_i32_1 = arith.constant 0 : i32
    return %c0_i32, %c0_i32_0 : i32, i32
  }
  func.func @transform_5(%arg0: i32) -> (i32, i32) {
    %c0_i32 = arith.constant 0 : i32
    %c0_i32_0 = arith.constant 0 : i32
    %c0_i32_1 = arith.constant 0 : i32
    return %c0_i32, %c0_i32_0 : i32, i32
  }
  func.func @transform_6(%arg0: i32) -> (i32, i32) {
    %c0_i32 = arith.constant 0 : i32
    %c0_i32_0 = arith.constant 0 : i32
    %c0_i32_1 = arith.constant 0 : i32
    return %c0_i32, %c0_i32_0 : i32, i32
  }
  func.func @transform_7(%arg0: i32) -> (i32, i32) {
    %c0_i32 = arith.constant 0 : i32
    %c0_i32_0 = arith.constant 0 : i32
    %c0_i32_1 = arith.constant 0 : i32
    return %c0_i32, %c0_i32_0 : i32, i32
  }
  func.func @transform_8(%arg0: i32) -> (i32, i32) {
    %c0_i32 = arith.constant 0 : i32
    %c0_i32_0 = arith.constant 0 : i32
    %c0_i32_1 = arith.constant 0 : i32
    return %c0_i32, %c0_i32_0 : i32, i32
  }
  func.func @transform_9(%arg0: i32) -> (i32, i32) {
    %c0_i32 = arith.constant 0 : i32
    %c0_i32_0 = arith.constant 0 : i32
    %c0_i32_1 = arith.constant 0 : i32
    return %c0_i32, %c0_i32_0 : i32, i32
  }
  func.func @transform_10(%arg0: i32) -> (i32, i32) {
    %c0_i32 = arith.constant 0 : i32
    %c0_i32_0 = arith.constant 0 : i32
    %c0_i32_1 = arith.constant 0 : i32
    return %c0_i32, %c0_i32_0 : i32, i32
  }
  func.func @transform_11(%arg0: i32) -> (i32, i32) {
    %c0_i32 = arith.constant 0 : i32
    %c0_i32_0 = arith.constant 0 : i32
    return %arg0, %c0_i32 : i32, i32
  }
}

</mosaic_0001>

<bundles_post_ra>
// kernel: latent_node_forward.3
= control target key start
LH: loop header
LB: loop body
LE: loop exit
PB: predicated region body
PF: predicated region fallthrough
CT: control target
= control target key end

     0   :  { %s1613_s17 = smov 0   ;;  %s1906_s0 = inlined_call_operand.vmem [shape: f32[16,128], index: 0, kind: input, shape index: {}]   ;;  %s1907_s1 = inlined_call_operand.vmem [shape: bf16[16,8,32], index: 1, kind: input, shape index: {}]   ;;  %s1908_s2 = inlined_call_operand.vmem [shape: bf16[32,32], index: 2, kind: input, shape index: {}]   ;;  %s1909_s3 = inlined_call_operand.vmem [shape: bf16[32,16], index: 3, kind: input, shape index: {}]   ;;  %s1910_s4 = inlined_call_operand.vmem [shape: bf16[32,16], index: 4, kind: input, shape index: {}]   ;;  %s1911_s5 = inlined_call_operand.vmem [shape: f32[1,16], index: 5, kind: input, shape index: {}]   ;;  %s1912_s6 = inlined_call_operand.vmem [shape: bf16[32,16], index: 6, kind: input, shape index: {}]   ;;  %s1913_s7 = inlined_call_operand.vmem [shape: f32[1,16], index: 7, kind: input, shape index: {}]   ;;  %s1914_s8 = inlined_call_operand.vmem [shape: bf16[16,16], index: 8, kind: input, shape index: {}]   ;;  %s1915_s9 = inlined_call_operand.vmem [shape: f32[1,16], index: 9, kind: input, shape index: {}]   ;;  %s1916_s10 = inlined_call_operand.vmem [shape: bf16[16,32], index: 10, kind: input, shape index: {}]   ;;  %s1917_s11 = inlined_call_operand.vmem [shape: f32[16,128], index: 11, kind: output, shape index: {}]  }
   0x1 LB: > { %s1619_s18 = sadd.s32 4294967295, %s1538_s17   ;;  %p1364_p0 = scmp.ge.s32.totalorder %s1538_s17, 1  ;;  %s1538_s17 = sphi %s1613_s17, %s21_s17  }
   0x2   : > { %p347_p1 = scmp.lt.s32.totalorder %s1538_s17, 3 }
   0x4   : > { %p348_p2 = pnand %p1364_p0, %p347_p1 }
   0x5   : > { %v1500_v0 = vld [vmem:[%s1908_s2] sm:$0xff] (!%p348_p2)   ;;  %v1540_v1 = vmov (!%p348_p2), 0.0   ;;  %v1501_v2 = vld [vmem:[%s1908_s2 + $0x8] sm:$0xff] (!%p348_p2)   ;;  %vm1541_vm0 = vmmov (!%p348_p2), 0   ;;  %p390_p3 = scmp.lt.s32.totalorder (!%p348_p2), %s1619_s18, 1  ;;  %vm423_vm1 = vcmask (!%p348_p2), 261120   ;;  %v536_v8 = vlaneseq (!%p348_p2) }
   0x6   : > { %351 = sbr.rel (%p348_p2) target bundleno = 2287 (0x8ef), region = 64  ;;  %1427 = vmatprep.subr.bf16.mxu0 (!%p348_p2), %v1540_v1  ;;  %1435 = vmatprep.subr.bf16.mxu1 (!%p348_p2), %v1540_v1  ;;  %v1542_v5 = vmov (!%p348_p2), 96   ;;  %s1366_s28 = sshll.u32 (!%p348_p2), %s1619_s18, 3  ;;  %v1543_v6 = vmov (!%p348_p2), 1966171168   ;;  %vm708_vm2 = vcmask (!%p348_p2), 1041409  }
   0x7   : > { %1428 = vmatpush3.bf16.msra.mxu0 (!%p348_p2), %v1500_v0  ;;  %1431 = vmatprep.mubr.msk.bf16.mxu0 (!%p348_p2), %vm1541_vm0, %v1540_v1  ;;  %p395_p4 = scmp.lt.s32.totalorder (!%p348_p2), %s1366_s28, 15  ;;  %v534_v7 = vunpack.c.l.s4 (!%p348_p2), %v1543_v6  ;;  %v1659_v10 = vshrl.u32 (!%p348_p2), %v536_v8, 7  ;;  %vm710_vm3 = vcmask (!%p348_p2), 1042434   ;;  %vm712_vm4 = vcmask (!%p348_p2), 1043459   ;;  %s1544_s16 = smov (!%p348_p2), 64  }
   0x8   : > { %1429 = vmatprep.subr.bf16.mxu0 (!%p348_p2), %v1540_v1  ;;  %1439 = vmatprep.mubr.msk.bf16.mxu1 (!%p348_p2), %vm1541_vm0, %v1540_v1  ;;  %vm714_vm5 = vcmask (!%p348_p2), 1044484   ;;  %vm716_vm6 = vcmask (!%p348_p2), 1045509   ;;  %vm718_vm7 = vcmask (!%p348_p2), 1046534   ;;  %vm720_vm8 = vcmask (!%p348_p2), 1047559   ;;  %s1546_s19 = smov (!%p348_p2), 1   ;;  %s1547_s20 = smov (!%p348_p2), 48  }
   0x9   : > { %1494 = vset.pattern.permute.xlu0 (!%p348_p2), %v1542_v5  ;;  %v535_v9 = vunpack.c.0.s8 (!%p348_p2), %v534_v7  ;;  %v1671_v17 = vsub.s32 (!%p348_p2), 0, %v1659_v10  ;;  %v662_v7 = vand.u32 (!%p348_p2), 127, %v536_v8  ;;  %vm724_vm9 = vcmask (!%p348_p2), 64512   ;;  %s1550_s25 = smov (!%p348_p2), 80  }
   0xa   : > { %vm1036_vm11 = vcmask (!%p348_p2), 130048   ;;  %vm1261_vm13 = vcmask (!%p348_p2), 261248   ;;  %vm1267_vm14 = vcmask (!%p348_p2), 392448   ;;  %vm1273_vm15 = vcmask (!%p348_p2), 523648  }
   0xb   : > { %1430 = vmatpush3.bf16.msra.mxu0 (!%p348_p2), %v1501_v2  ;;  %v538_v11 = vsub.s32 (!%p348_p2), %v535_v9, %v1659_v10 }
   0xc   : > { %1443 = vmatprep.subr.bf16.mxu0 (!%p348_p2), %v1540_v1 }
   0xd   : > { %s1638_s23 = scalar_select %p390_p3, %s1619_s18, 1 }
   0xe   : > { %s1919_s28 = smov (!%p395_p4, %s1366_s28), 15  ;;  %s1545_s18 = smov 96  }
   0xf   : > { %s1365_s24 = sshll.u32 %s1638_s23, 3  ;;  %s1367_s29 = sshll.u32 %s1919_s28, 2 }
  0x10   : > { %s393_s27 = scalar_lea.vmem %s1906_s0, %s1365_s24  ;;  %s1665_s13 = scalar_lea.vmem %s1907_s1, %s1367_s29 }
  0x11   : > { %v1647_v3 = vld [vmem:[%s393_s27] sm:$0xff]  ;;  %v1675_v24 = vld [vmem:[%s1665_s13 + $0x8] sm:$0xff]   ;;  %v1679_v26 = vld [vmem:[%s1665_s13 + $0x10] sm:$0xff]   ;;  %s1875_s30 = scalar_lea.vmem %s1917_s11, %s1365_s24  ;;  %s1551_s23 = smov 16  }
  0x12   : > { %v1651_v4 = vpack.c.bf16 %v1647_v3, %v1647_v3  ;;  %v1668_v13 = vld [vmem:[%s1665_s13] sm:$0xff]   ;;  %v1398_v31 = vunpack.c.l.bf16 %v1675_v24  ;;  %v1402_v36 = vunpack.c.l.bf16 %v1679_v26  ;;  %v1399_v38 = vunpack.c.h.bf16 %v1675_v24  ;;  %v1697_v46 = vld [vmem:[%s1665_s13 + $0x18] sm:$0xff]   ;;  %s1552_s24 = smov 32  }
  0x13   : > { %v1394_v23 = vunpack.c.l.bf16 %v1668_v13  ;;  %v1395_v25 = vunpack.c.h.bf16 %v1668_v13  ;;  %v1403_v47 = vunpack.c.h.bf16 %v1679_v26  ;;  %v1406_v54 = vunpack.c.l.bf16 %v1697_v46 }
  0x14   : > { %1432 = vmatmul.mubr.msk.bf16.vlgmr.msra.gmra.mrb[0].mxu0 %vm423_vm1, %v1651_v4  ;;  %v1407_v58 = vunpack.c.h.bf16 %v1697_v46  ;;  %v1471_v5 = vtrunc.f32 %v1647_v3 }
  0x15   : > { %1447 = vmatprep.mubr.msk.bf16.mxu0 %vm1541_vm0, %v1540_v1 }
  0x16   : > { %v1472_v6 = vcvt.f32.s32 %v1471_v5  ;;  %v766_v5 = vsub.s32 4, %v1659_v10 }
  0xe7   : > { %v461_v12 = vpop.f32.mrb[0].mxu0 }
  0xe8   : > { %v532_v14 = vcombine.high %v461_v12, %v461_v12  ;;  %v539_v15 = vrot.slane %v461_v12, %v538_v11  ;;  %v1433_v16 = vpop.f32.mrb[1].mxu0 }
  0xe9   : > { %v464_v18 = vpop.f32.mrb[2].mxu0 }
  0xea   : > { %v546_v19 = vrot.slane %v532_v14, %v538_v11  ;;  %v547_v20 = vcombine.high %v539_v15, %v539_v15  ;;  %v555_v21 = vrot.slane %v539_v15, %v538_v11  ;;  %v1434_v22 = vpop.f32.mrb[3].mxu0 }
  0xec   : > { %v548_v27 = vcombine.high %v546_v19, %v546_v19  ;;  %v562_v28 = vrot.slane %v546_v19, %v538_v11  ;;  %v569_v29 = vrot.slane %v547_v20, %v538_v11  ;;  %v592_v30 = vrot.slane %v555_v21, %v1671_v17 }
  0xed   : > { %v577_v32 = vcombine.high %v555_v21, %v555_v21 }
  0xee   : > { %v629_v33 = vmul.f32 %v1394_v23, %v592_v30  ;;  %v596_v34 = vrot.slane %v569_v29, %v1671_v17  ;;  %v579_v35 = vcombine.high %v569_v29, %v569_v29  ;;  %v608_v39 = vrot.slane %v562_v28, %v1671_v17 }
  0xef   : > { %v600_v37 = vrot.slane %v577_v32, %v1671_v17  ;;  %v576_v40 = vrot.slane %v548_v27, %v538_v11  ;;  %v578_v44 = vcombine.high %v562_v28, %v562_v28  ;;  %v678_v11 = vsub.s32 %v662_v7, %v1659_v10 }
  0xf0   : > { %v637_v41 = vsel %vm423_vm1, %v629_v33, 0.0  ;;  %v630_v42 = vmul.f32 %v1395_v25, %v596_v34  ;;  %v604_v43 = vrot.slane %v579_v35, %v1671_v17  ;;  %v633_v53 = vmul.f32 %v1402_v36, %v608_v39 }
  0xf1   : > { %638 = vadd.xlane.f32.xlu0 %v637_v41  ;;  %v631_v45 = vmul.f32 %v1398_v31, %v600_v37  ;;  %v612_v50 = vrot.slane %v576_v40, %v1671_v17  ;;  %v580_v51 = vcombine.high %v576_v40, %v576_v40  ;;  %v616_v55 = vrot.slane %v578_v44, %v1671_v17 }
  0xf2   : > { %v632_v49 = vmul.f32 %v1399_v38, %v604_v43  ;;  %v640_v52 = vsel %vm423_vm1, %v630_v42, 0.0  ;;  %v649_v60 = vsel %vm423_vm1, %v633_v53, 0.0  ;;  %v780_v53 = vsub.s32 6, %v1659_v10 }
  0xf3   : > { %v643_v48 = vsel %vm423_vm1, %v631_v45, 0.0  ;;  %v634_v57 = vmul.f32 %v1403_v47, %v612_v50  ;;  %v620_v59 = vrot.slane %v580_v51, %v1671_v17  ;;  %v635_v61 = vmul.f32 %v1406_v54, %v616_v55 }
  0xf4   : > { %644 = vadd.xlane.f32.xlu1 %v643_v48  ;;  %v646_v56 = vsel %vm423_vm1, %v632_v49, 0.0 }
  0xf5   : > { %641 = vadd.xlane.f32.xlu0 %v640_v52  ;;  %v652_v62 = vsel %vm423_vm1, %v634_v57, 0.0  ;;  %v636_v63 = vmul.f32 %v1407_v58, %v620_v59  ;;  %v655_v0 = vsel %vm423_vm1, %v635_v61, 0.0 }
  0xf7   : > { %v658_v2 = vsel %vm423_vm1, %v636_v63, 0.0 }
  0xf8   : > { %647 = vadd.xlane.f32.xlu1 %v646_v56 }
  0xf9   : > { %650 = vadd.xlane.f32.xlu0 %v649_v60  ;;  %v745_v60 = vsub.s32 1, %v1659_v10 }
  0xfc   : > { %653 = vadd.xlane.f32.xlu1 %v652_v62  ;;  %v752_v62 = vsub.s32 2, %v1659_v10 }
  0xfd   : > { %656 = vadd.xlane.f32.xlu0 %v655_v0  ;;  %v759_v0 = vsub.s32 3, %v1659_v10 }
 0x100   : > { %659 = vadd.xlane.f32.xlu1 %v658_v2 }
 0x113   : > { %665 = vperm.xlu0 %1494, %v1472_v6   ;;  %v773_v6 = vsub.s32 5, %v1659_v10 }
 0x17e   : > { %v639_v9 = vpop.xlane.xlu0 %638 }
 0x17f   : > { %v679_v15 = vrot.slane %v639_v9, %v678_v11 }
 0x181   : > { %v645_v12 = vpop.xlane.xlu1 %644 }
 0x182   : > { %v642_v14 = vpop.xlane.xlu0 %641  ;;  %v687_v18 = vrot.slane %v645_v12, %v678_v11  ;;  %v1503_v12 = vld [vmem:[%s1909_s3 + $0x8] sm:$0xff]  }
 0x183   : > { %v683_v16 = vrot.slane %v642_v14, %v678_v11 }
 0x185   : > { %v709_v19 = vsel %vm708_vm2, %v683_v16, %v679_v15  ;;  %v648_v20 = vpop.xlane.xlu1 %647  ;;  %v1505_v15 = vld [vmem:[%s1910_s4] sm:$0xff]   ;;  %v1507_v16 = vld [vmem:[%s1910_s4 + $0x8] sm:$0xff]  }
 0x186   : > { %v711_v21 = vsel %vm710_vm3, %v687_v18, %v709_v19  ;;  %v691_v22 = vrot.slane %v648_v20, %v678_v11  ;;  %v651_v27 = vpop.xlane.xlu0 %650  ;;  %1444 = vmatpush3.bf16.msra.mxu0 %v1505_v15 }
 0x187   : > { %v695_v8 = vrot.slane %v651_v27, %v678_v11  ;;  %1445 = vmatprep.subr.bf16.mxu0 %v1540_v1 }
 0x188   : > { %v713_v28 = vsel %vm712_vm4, %v691_v22, %v711_v21 }
 0x189   : > { %v654_v29 = vpop.xlane.xlu1 %653  ;;  %v715_v30 = vsel %vm714_vm5, %v695_v8, %v713_v28 }
 0x18a   : > { %v699_v32 = vrot.slane %v654_v29, %v678_v11  ;;  %v657_v33 = vpop.xlane.xlu0 %656  ;;  %1446 = vmatpush3.bf16.msra.mxu0 %v1507_v16 }
 0x18b   : > { %v703_v34 = vrot.slane %v657_v33, %v678_v11  ;;  %1459 = vmatprep.subr.bf16.mxu0 %v1540_v1 }
 0x18c   : > { %v717_v35 = vsel %vm716_vm6, %v699_v32, %v715_v30 }
 0x18d   : > { %v660_v37 = vpop.xlane.xlu1 %659  ;;  %v719_v40 = vsel %vm718_vm7, %v703_v34, %v717_v35 }
 0x18e   : > { %v707_v39 = vrot.slane %v660_v37, %v678_v11  ;;  %v787_v11 = vsub.s32 7, %v1659_v10  ;;  %v1504_v10 = vld [vmem:[%s1912_s6] sm:$0xff]  }
 0x190   : > { %v721_v42 = vsel %vm720_vm8, %v707_v39, %v719_v40 }
 0x192   : > { %v666_v41 = vpop.permute.xlu0 %665 }
 0x193   : > { %vm667_vm10 = vcmp.lt.s32.totalorder %v662_v7, %v666_v41  ;;  %v1502_v7 = vld [vmem:[%s1909_s3] sm:$0xff]  }
 0x194   : > { %v723_v43 = vsel %vm667_vm10, %v721_v42, -1e+30  ;;  %1436 = vmatpush3.bf16.msra.mxu1 %v1502_v7 }
 0x195   : > { %v725_v44 = vsel %vm724_vm9, %v723_v43, -inf  ;;  %1437 = vmatprep.subr.bf16.mxu1 %v1540_v1 }
 0x196   : > { %726 = vmax.xlane.f32.xlu1 %v725_v44 }
 0x198   : > { %1438 = vmatpush3.bf16.msra.mxu1 %v1503_v12 }
 0x199   : > { %1451 = vmatprep.subr.bf16.mxu1 %v1540_v1 }
 0x19b   : > { %1440 = vmatmul.mubr.msk.bf16.vlgmr.msra.gmra.mrb[0].mxu1 %vm423_vm1, %v1651_v4  ;;  %v1506_v4 = vld [vmem:[%s1912_s6 + $0x8] sm:$0xff]  }
 0x19c   : > { %1455 = vmatprep.mubr.msk.bf16.mxu1 %vm1541_vm0, %v1540_v1  ;;  %1452 = vmatpush3.bf16.msra.mxu1 %v1504_v10 }
 0x19d   : > { %1453 = vmatprep.subr.bf16.mxu1 %v1540_v1 }
 0x1a0   : > { %1454 = vmatpush3.bf16.msra.mxu1 %v1506_v4 }
 0x1a1   : > { %1465 = vmatprep.subr.bf16.mxu1 %v1540_v1 }
 0x223   : > { %v727_v45 = vpop.xlane.xlu1 %726 }
 0x224   : > { %v728_v48 = vsub.f32 %v723_v43, %v727_v45 }
 0x226   : > { %v729_v49 = vmul.f32 1.442695, %v728_v48 }
 0x228   : > { %1510 = vpow2.f32 %v729_v49 }
 0x232   : > { %v1511_v50 = vpop.eup %1510 }
 0x233   : > { %v731_v51 = vsel %vm724_vm9, %v1511_v50, 0.0 }
 0x234   : > { %732 = vadd.xlane.f32.xlu1 %v731_v51 }
 0x2c1   : > { %v733_v52 = vpop.xlane.xlu1 %732 }
 0x2c2   : > { %1512 = vrcp.f32 %v733_v52 }
 0x2cc   : > { %v1513_v55 = vpop.eup %1512 }
 0x2cd   : > { %v1733_v56 = vmul.f32 %v1513_v55, %v1511_v50 }
 0x2cf   : > { %v781_v57 = vrot.slane %v1733_v56, %v780_v53  ;;  %v739_v59 = vrot.slane %v1733_v56, %v1671_v17  ;;  %v746_v61 = vrot.slane %v1733_v56, %v745_v60  ;;  %v753_v63 = vrot.slane %v1733_v56, %v752_v62 }
 0x2d0   : > { %v760_v2 = vrot.slane %v1733_v56, %v759_v0  ;;  %v767_v17 = vrot.slane %v1733_v56, %v766_v5  ;;  %v774_v9 = vrot.slane %v1733_v56, %v773_v6  ;;  %v788_v14 = vrot.slane %v1733_v56, %v787_v11 }
 0x2d1   : > { %783 = vbcast.lane.b32.xlu0 %v781_v57, 256  ;;  %741 = vbcast.lane.b32.xlu1 %v739_v59, 256 }
 0x2d5   : > { %748 = vbcast.lane.b32.xlu1 %v746_v61, 256 }
 0x2d9   : > { %755 = vbcast.lane.b32.xlu1 %v753_v63, 256 }
 0x2dd   : > { %762 = vbcast.lane.b32.xlu1 %v760_v2, 256 }
 0x2e1   : > { %769 = vbcast.lane.b32.xlu1 %v767_v17, 256 }
 0x2e5   : > { %776 = vbcast.lane.b32.xlu1 %v774_v9, 256 }
 0x2e9   : > { %790 = vbcast.lane.b32.xlu1 %v788_v14, 256 }
 0x343   : > { %v742_v18 = vpop.permute.xlu1 %741  ;;  %v784_v20 = vpop.permute.xlu0 %783 }
 0x344   : > { %v792_v19 = vmul.f32 %v1394_v23, %v742_v18  ;;  %v798_v27 = vmul.f32 %v1406_v54, %v784_v20 }
 0x346   : > { %v800_v21 = vsel %vm423_vm1, %v792_v19, 0.0  ;;  %v842_v33 = vsel %vm423_vm1, %v798_v27, 0.0 }
 0x347   : > { %v749_v22 = vpop.permute.xlu1 %748  ;;  %v801_v8 = vrot.slane %v800_v21, 4  ;;  %v843_v39 = vrot.slane %v842_v33, 4 }
 0x348   : > { %v793_v28 = vmul.f32 %v1395_v25, %v749_v22 }
 0x349   : > { %v802_v34 = vadd.f32 %v801_v8, %v800_v21  ;;  %v844_v44 = vadd.f32 %v843_v39, %v842_v33 }
 0x34a   : > { %v807_v29 = vsel %vm423_vm1, %v793_v28, 0.0 }
 0x34b   : > { %v808_v30 = vrot.slane %v807_v29, 4  ;;  %v756_v32 = vpop.permute.xlu1 %755  ;;  %v803_v42 = vrot.slane %v802_v34, 2  ;;  %v845_v57 = vrot.slane %v844_v44, 2 }
 0x34c   : > { %v794_v23 = vmul.f32 %v1398_v31, %v756_v32 }
 0x34d   : > { %v809_v35 = vadd.f32 %v808_v30, %v807_v29  ;;  %v804_v50 = vadd.f32 %v803_v42, %v802_v34  ;;  %v846_v17 = vadd.f32 %v845_v57, %v844_v44 }
 0x34e   : > { %v814_v37 = vsel %vm423_vm1, %v794_v23, 0.0 }
 0x34f   : > { %v810_v40 = vrot.slane %v809_v35, 2  ;;  %v815_v54 = vrot.slane %v814_v37, 4  ;;  %v763_v41 = vpop.permute.xlu1 %762  ;;  %v805_v60 = vrot.slane %v804_v50, 1  ;;  %v847_v21 = vrot.slane %v846_v17, 1 }
 0x350   : > { %v795_v13 = vmul.f32 %v1399_v38, %v763_v41 }
 0x351   : > { %v816_v25 = vadd.f32 %v815_v54, %v814_v37  ;;  %v811_v45 = vadd.f32 %v810_v40, %v809_v35  ;;  %v806_v11 = vadd.f32 %v805_v60, %v804_v50  ;;  %v848_v34 = vadd.f32 %v847_v21, %v846_v17 }
 0x352   : > { %v821_v43 = vsel %vm423_vm1, %v795_v13, 0.0 }
 0x353   : > { %v817_v48 = vrot.slane %v816_v25, 2  ;;  %v770_v49 = vpop.permute.xlu1 %769  ;;  %v822_v31 = vrot.slane %v821_v43, 4  ;;  %v812_v59 = vrot.slane %v811_v45, 1  ;;  %v856_v22 = vpack.c.bf16 %v806_v11, %v806_v11 }
 0x354   : > { %v796_v51 = vmul.f32 %v1402_v36, %v770_v49 }
 0x355   : > { %v818_v52 = vadd.f32 %v817_v48, %v816_v25  ;;  %v823_v53 = vadd.f32 %v822_v31, %v821_v43  ;;  %v813_v36 = vadd.f32 %v812_v59, %v811_v45  ;;  %v883_v35 = vunpack.c.l.b16 %v856_v22  ;;  %v1815_v59 = vpop.f32.mrb[0].mxu1 }
 0x356   : > { %v828_v55 = vsel %vm423_vm1, %v796_v51, 0.0  ;;  %v862_v25 = vpack.c.bf16 %v848_v34, %v848_v34 }
 0x357   : > { %v829_v24 = vrot.slane %v828_v55, 4  ;;  %v777_v38 = vpop.permute.xlu1 %776  ;;  %v819_v61 = vrot.slane %v818_v52, 1  ;;  %v824_v62 = vrot.slane %v823_v53, 2 }
 0x358   : > { %v797_v63 = vmul.f32 %v1403_v47, %v777_v38  ;;  %v857_v47 = vpack.c.bf16 %v813_v36, %v813_v36  ;;  %v889_v51 = vunpack.c.l.b16 %v862_v25 }
 0x359   : > { %v830_v0 = vadd.f32 %v829_v24, %v828_v55  ;;  %v825_v2 = vadd.f32 %v824_v62, %v823_v53  ;;  %v820_v12 = vadd.f32 %v819_v61, %v818_v52  ;;  %v1441_v24 = vpop.f32.mrb[1].mxu1  ;;  %v1379_v61 = vld [vmem:[%s1913_s7] ss:$0 sm:$0xff] }
 0x35a   : > { %v835_v5 = vsel %vm423_vm1, %v797_v63, 0.0  ;;  %v884_v32 = vunpack.c.l.b16 %v857_v47  ;;  %v520_v38 = vpop.f32.mrb[2].mxu1 }
 0x35b   : > { %v831_v6 = vrot.slane %v830_v0, 2  ;;  %v836_v7 = vrot.slane %v835_v5, 4  ;;  %v791_v9 = vpop.permute.xlu1 %790  ;;  %v826_v14 = vrot.slane %v825_v2, 1  ;;  %v858_v27 = vpack.c.bf16 %v820_v12, %v820_v12  ;;  %v1442_v60 = vpop.f32.mrb[3].mxu1  ;;  %v1508_v12 = vld [vmem:[%s1914_s8] sm:$0xff]  }
 0x35c   : > { %v799_v10 = vmul.f32 %v1407_v58, %v791_v9  ;;  %v891_v41 = vsel %vm708_vm2, %v884_v32, %v883_v35  ;;  %v1245_v60 = vsel %vm1036_vm11, %v1815_v59, -inf  ;;  %vm1287_vm2 = vcmask 859968  }
 0x35d   : > { %v832_v15 = vadd.f32 %v831_v6, %v830_v0  ;;  %v837_v4 = vadd.f32 %v836_v7, %v835_v5  ;;  %v827_v16 = vadd.f32 %v826_v14, %v825_v2  ;;  %v885_v23 = vunpack.c.l.b16 %v858_v27  ;;  %v1375_v14 = vld [vmem:[%s1911_s5] ss:$0 sm:$0xff] }
 0x35e   : > { %v849_v26 = vsel %vm423_vm1, %v799_v10, 0.0 }
 0x35f   : > { %v833_v18 = vrot.slane %v832_v15, 1  ;;  %v838_v19 = vrot.slane %v837_v4, 2  ;;  %v850_v20 = vrot.slane %v849_v26, 4  ;;  %v859_v8 = vpack.c.bf16 %v827_v16, %v827_v16 }
 0x360   : > { %v892_v43 = vsel %vm710_vm3, %v885_v23, %v891_v41  ;;  %vm1289_vm3 = vcmask 868168  }
 0x361   : > { %v834_v28 = vadd.f32 %v833_v18, %v832_v15  ;;  %v839_v29 = vadd.f32 %v838_v19, %v837_v4  ;;  %v851_v30 = vadd.f32 %v850_v20, %v849_v26  ;;  %v886_v37 = vunpack.c.l.b16 %v859_v8 }
 0x362   : > { %v1835_v18 = vmul.f32 0.5, %v1647_v3 }
 0x363   : > { %v860_v33 = vpack.c.bf16 %v834_v28, %v834_v28  ;;  %v840_v46 = vrot.slane %v839_v29, 1  ;;  %v852_v58 = vrot.slane %v851_v30, 2  ;;  %v893_v44 = vsel %vm712_vm4, %v886_v37, %v892_v43 }
 0x364   : > { %v1105_v19 = vsub.f32 1.0, %v1835_v18  ;;  %vm1291_vm4 = vcmask 876368  }
 0x365   : > { %v841_v39 = vadd.f32 %v840_v46, %v839_v29  ;;  %v853_v40 = vadd.f32 %v852_v58, %v851_v30  ;;  %v887_v54 = vunpack.c.l.b16 %v860_v33  ;;  %v1548_v30 = vmov 98   ;;  %v1384_v58 = vld [vmem:[%s1915_s9] ss:$0 sm:$0xff] }
 0x366   : > { %1496 = vset.pattern.permute.xlu1 %v1548_v30  ;;  %1495 = vset.pattern.permute.xlu0 %v1548_v30  ;;  %v1549_v46 = vmov 97  }
 0x367   : > { %v861_v42 = vpack.c.bf16 %v841_v39, %v841_v39  ;;  %v854_v13 = vrot.slane %v853_v40, 1  ;;  %v894_v49 = vsel %vm714_vm5, %v887_v54, %v893_v44  ;;  %vm1293_vm5 = vcmask 1048408  }
 0x369   : > { %v888_v45 = vunpack.c.l.b16 %v861_v42  ;;  %v855_v48 = vadd.f32 %v854_v13, %v853_v40 }
 0x36b   : > { %v895_v50 = vsel %vm716_vm6, %v888_v45, %v894_v49  ;;  %v863_v31 = vpack.c.bf16 %v855_v48, %v855_v48 }
 0x36c   : > { %v896_v53 = vsel %vm718_vm7, %v889_v51, %v895_v50  ;;  %v1509_v51 = vld [vmem:[%s1916_s10] sm:$0xff]  }
 0x36d   : > { %v890_v52 = vunpack.c.l.b16 %v863_v31 }
 0x36f   : > { %v897_v55 = vsel %vm720_vm8, %v890_v52, %v896_v53 }
 0x370   : > { %v898_v57 = vpack.c.b16 %v897_v55, %v897_v55 }
 0x372   : > { %1448 = vmatmul.mubr.msk.bf16.vlgmr.msra.gmra.mrb[4].mxu0 %vm423_vm1, %v898_v57  ;;  %1456 = vmatmul.mubr.msk.bf16.vlgmr.msra.gmra.mrb[4].mxu1 %vm423_vm1, %v898_v57  ;;  %vm1285_vm1 = vcmask 851712  }
 0x373   : > { %1461 = vmatprep.mubr.msk.bf16.mxu0 %vm1541_vm0, %v1540_v1  ;;  %1467 = vmatprep.mubr.msk.bf16.mxu1 %vm1541_vm0, %v1540_v1  ;;  %vm1279_vm0 = vcmask 785920  }
 0x374   : > { %1460 = vmatpush3.bf16.msra.mxu0 %v1508_v12  ;;  %1466 = vmatpush3.bf16.msra.mxu1 %v1509_v51 }
 0x445   : > { %v948_v62 = vpop.f32.mrb[4].mxu0  ;;  %v1011_v63 = vpop.f32.mrb[4].mxu1 }
 0x446   : > { %v1820_v0 = vadd.f32 %v1379_v61, %v1011_v63  ;;  %v1449_v2 = vpop.f32.mrb[5].mxu0  ;;  %v1457_v5 = vpop.f32.mrb[5].mxu1  ;;  %v949_v10 = vadd.f32 %v1375_v14, %v948_v62 }
 0x447   : > { %v951_v17 = vpop.f32.mrb[6].mxu0  ;;  %v1014_v36 = vpop.f32.mrb[6].mxu1 }
 0x448   : > { %v1017_v6 = vmul.f32 0.5, %v1820_v0  ;;  %v1450_v7 = vpop.f32.mrb[7].mxu0  ;;  %v1458_v9 = vpop.f32.mrb[7].mxu1  ;;  %v1031_v4 = vmul.f32 %v949_v10, %v949_v10 }
 0x44a   : > { %v1018_v11 = vmul.f32 1.442695, %v1017_v6 }
 0x44c   : > { %1514 = vpow2.f32 %v1018_v11 }
 0x456   : > { %v1515_v15 = vpop.eup %1514 }
 0x457   : > { %v1020_v16 = vmul.f32 %v1515_v15, %v1515_v15  ;;  %1022 = vrot.lane.b32.xlu0 %v1515_v15, %s1544_s16 }
 0x459   : > { %v1830_v26 = vadd.f32 %v1031_v4, %v1020_v16 }
 0x45b   : > { %v1033_v47 = vsub.f32 %v1830_v26, %v1820_v0  ;;  %1100 = vrot.lane.b32.xlu0 %v1647_v3, %s1545_s18 }
 0x45d   : > { %v1383_v14 = vadd.f32 -1.0, %v1033_v47 }
 0x45f   : > { %1107 = vrot.lane.b32.xlu0 %v1105_v19, %s1546_s19 }
 0x4c9   : > { %v1023_v20 = vpop.permute.xlu0 %1022 }
 0x4ca   : > { %v1025_v21 = vmul.f32 %v1023_v20, %v1647_v3 }
 0x4cc   : > { %1027 = vrot.lane.b32.xlu1 %v1025_v21, %s1544_s16 }
 0x4cd   : > { %v1101_v28 = vpop.permute.xlu0 %1100 }
 0x4d0   : > { %1159 = vrot.lane.b32.xlu1 %v1647_v3, %s1547_s20 }
 0x4d1   : > { %v1108_v29 = vpop.permute.xlu0 %1107 }
 0x4d2   : > { %vm1110_vm12 = vcmp.lt.f32.partialorder %v1647_v3, %v1108_v29 }
 0x4d3   : > { %v1387_v32 = vsel %vm1110_vm12, 1.0, %v1540_v1 }
 0x4d4   : > { %v1181_v33 = vsub.f32 1.0, %v1387_v32 }
 0x4d6   : > { %1184 = vperm.xlu0 %1495, %v1181_v33  }
 0x4da   : > { %1498 = vset.pattern.permute.xlu0 %v1549_v46 }
 0x53e   : > { %v1028_v22 = vpop.permute.xlu1 %1027 }
 0x53f   : > { %v1030_v27 = vadd.f32 %v1028_v22, %v949_v10 }
 0x541   : > { %v1040_v8 = vpack.c.bf16 %v1030_v27, %v1030_v27 }
 0x542   : > { %v1160_v39 = vpop.permute.xlu1 %1159 }
 0x543   : > { %1462 = vmatmul.mubr.msk.bf16.vlgmr.msra.gmra.mrb[8].mxu0 %vm1036_vm11, %v1040_v8 }
 0x555   : > { %v1185_v50 = vpop.permute.xlu0 %1184 }
 0x556   : > { %v1187_v31 = vmul.f32 %v1185_v50, %v1647_v3 }
 0x616   : > { %v1093_v34 = vpop.f32.mrb[8].mxu0 }
 0x617   : > { %v1094_v23 = vadd.f32 %v1384_v58, %v1093_v34  ;;  %v1463_v35 = vpop.f32.mrb[9].mxu0 }
 0x618   : > { %v1096_v37 = vpop.f32.mrb[10].mxu0 }
 0x619   : > { %v1103_v40 = vadd.f32 %v1101_v28, %v1094_v23  ;;  %v1464_v54 = vpop.f32.mrb[11].mxu0 }
 0x61b   : > { %v1162_v41 = vadd.f32 %v1160_v39, %v1103_v40  ;;  %v1113_v25 = vsel %vm1036_vm11, %v1103_v40, -inf }
 0x61d   : > { %v1163_v42 = vmul.f32 2.0, %v1162_v41 }
 0x61f   : > { %v1164_v13 = vsel %vm1036_vm11, %v1163_v42, -inf }
 0x620   : > { %1165 = vmax.xlane.f32.xlu1 %v1164_v13 }
 0x631   : > { %1177 = vperm.xlu1 %1496, %v1387_v32  }
 0x635   : > { %1497 = vset.pattern.permute.xlu1 %v1549_v46 }
 0x655   : > { %1114 = vmax.xlane.f32.xlu1 %v1113_v25 }
 0x666   : > { %1129 = vperm.xlu1 %1497, %v1835_v18   ;;  %v1035_v18 = vmul.f32 0.5, %v1383_v14 }
 0x668   : > { %v1037_v8 = vsel %vm1036_vm11, %v1035_v18, 0.0 }
 0x6ad   : > { %v1166_v43 = vpop.xlane.xlu1 %1165 }
 0x6ae   : > { %v1167_v44 = vsub.f32 %v1163_v42, %v1166_v43 }
 0x6b0   : > { %v1168_v45 = vmul.f32 1.442695, %v1167_v44 }
 0x6b1   : > { %v1178_v52 = vpop.permute.xlu1 %1177 }
 0x6b2   : > { %1516 = vpow2.f32 %v1168_v45 }
 0x6bc   : > { %v1517_v48 = vpop.eup %1516 }
 0x6bd   : > { %v1170_v49 = vsel %vm1036_vm11, %v1517_v48, 0.0 }
 0x6be   : > { %1171 = vadd.xlane.f32.xlu0 %v1170_v49 }
 0x6d4   : > { %1189 = vrot.lane.b32.xlu0 %v1187_v31, %s1550_s25 }
 0x6e2   : > { %v1115_v53 = vpop.xlane.xlu1 %1114 }
 0x6e3   : > { %v1116_v55 = vsub.f32 %v1103_v40, %v1115_v53 }
 0x6e5   : > { %v1117_v57 = vmul.f32 1.442695, %v1116_v55 }
 0x6e6   : > { %v1860_v24 = vpop.permute.xlu1 %1129 }
 0x6e7   : > { %v1142_v38 = vmul.f32 %v1860_v24, %v1647_v3  ;;  %1518 = vpow2.f32 %v1117_v57 }
 0x6e9   : > { %1144 = vrot.lane.b32.xlu1 %v1142_v38, %s1550_s25 }
 0x6f1   : > { %v1519_v61 = vpop.eup %1518 }
 0x6f2   : > { %v1119_v62 = vsel %vm1036_vm11, %v1519_v61, 0.0 }
 0x6f3   : > { %1246 = vmax.xlane.f32.xlu0 %v1245_v60 }
 0x6f7   : > { %1120 = vadd.xlane.f32.xlu0 %v1119_v62 }
 0x70d   : > { %1138 = vperm.xlu0 %1498, %v1105_v19  }
 0x711   : > { %1133 = vrot.lane.b32.xlu0 %v1647_v3, %s1550_s25 }
 0x712   : > { %1499 = vset.pattern.permute.xlu0 %v1548_v30 }
 0x74b   : > { %v1172_v63 = vpop.xlane.xlu0 %1171 }
 0x74c   : > { %1520 = vrcp.f32 %v1172_v63 }
 0x74f   : > { %v1190_v36 = vpop.permute.xlu0 %1189 }
 0x756   : > { %v1521_v2 = vpop.eup %1520 }
 0x757   : > { %v1174_v5 = vmul.f32 %v1521_v2, %v1517_v48 }
 0x759   : > { %v1180_v17 = vmul.f32 %v1178_v52, %v1174_v5 }
 0x75b   : > { %v1192_v6 = vadd.f32 %v1190_v36, %v1180_v17 }
 0x75d   : > { %v1193_v7 = vpack.c.bf16 %v1192_v6, %v1192_v6  ;;  %1256 = vst.msk [vmem:[%s1875_s30] sm:$0xff] %vm1036_vm11, %v1192_v6 }
 0x75f   : > { %1468 = vmatmul.mubr.msk.bf16.vlgmr.msra.gmra.mrb[8].mxu1 %vm1036_vm11, %v1193_v7 }
 0x780   : > { %v1247_v3 = vpop.xlane.xlu0 %1246 }
 0x781   : > { %v1248_v9 = vsub.f32 %v1815_v59, %v1247_v3  ;;  %v1145_v59 = vpop.permute.xlu1 %1144 }
 0x783   : > { %v1249_v11 = vmul.f32 1.442695, %v1248_v9 }
 0x784   : > { %v1121_v12 = vpop.xlane.xlu0 %1120 }
 0x785   : > { %1522 = vpow2.f32 %v1249_v11 }
 0x786   : > { %1524 = vrcp.f32 %v1121_v12 }
 0x787   : > { %1526 = vlog2.f32 %v1121_v12 }
 0x78c   : > { %v1139_v4 = vpop.permute.xlu0 %1138 }
 0x78f   : > { %v1523_v10 = vpop.eup %1522 }
 0x790   : > { %v1525_v15 = vpop.eup %1524  ;;  %v1251_v16 = vsel %vm1036_vm11, %v1523_v10, 0.0  ;;  %v1134_v54 = vpop.permute.xlu0 %1133 }
 0x791   : > { %v1527_v19 = vpop.eup %1526  ;;  %v1123_v20 = vmul.f32 %v1525_v15, %v1519_v61  ;;  %1252 = vadd.xlane.f32.xlu1 %v1251_v16 }
 0x792   : > { %v1125_v21 = vmul.f32 0.6931472, %v1527_v19 }
 0x793   : > { %v1141_v22 = vmul.f32 %v1139_v4, %v1123_v20 }
 0x794   : > { %v1126_v27 = vsub.f32 %v1116_v55, %v1125_v21 }
 0x795   : > { %v1147_v28 = vadd.f32 %v1145_v59, %v1141_v22  ;;  %1038 = vadd.xlane.f32.xlu1 %v1037_v8 }
 0x796   : > { %v1155_v29 = vmul.f32 %v1126_v27, %v1123_v20  ;;  %v1132_v40 = vmul.f32 %v1860_v24, %v1126_v27 }
 0x797   : > { %v1148_v0 = vadd.f32 1e-10, %v1147_v28 }
 0x798   : > { %v1156_v39 = vsel %vm1036_vm11, %v1155_v29, 0.0  ;;  %v1136_v41 = vmul.f32 %v1134_v54, %v1132_v40 }
 0x799   : > { %1528 = vlog2.f32 %v1148_v0 }
 0x7a3   : > { %v1529_v26 = vpop.eup %1528 }
 0x7a4   : > { %v1150_v47 = vmul.f32 0.6931472, %v1529_v26 }
 0x7a6   : > { %v1151_v30 = vmul.f32 %v1150_v47, %v1147_v28 }
 0x7a8   : > { %v1152_v32 = vsel %vm1036_vm11, %v1151_v30, 0.0 }
 0x7a9   : > { %1153 = vadd.xlane.f32.xlu0 %v1152_v32 }
 0x81e   : > { %v1253_v33 = vpop.xlane.xlu1 %1252 }
 0x81f   : > { %1530 = vrcp.f32 %v1253_v33 }
 0x822   : > { %v1039_v42 = vpop.xlane.xlu1 %1038 }
 0x829   : > { %v1531_v46 = vpop.eup %1530 }
 0x82a   : > { %v1255_v58 = vmul.f32 %v1531_v46, %v1523_v10 }
 0x82c   : > { %1258 = vrot.lane.b32.xlu1 %v1255_v58, %s1551_s23 }
 0x830   : > { %1270 = vrot.lane.b32.xlu1 %v1174_v5, %s1547_s20 }
 0x832   : > { %v1239_v34 = vpop.f32.mrb[8].mxu1 }
 0x833   : > { %v1469_v23 = vpop.f32.mrb[9].mxu1  ;;  %1276 = vrot.lane.b32.xlu0 %v1239_v34, %s1544_s16 }
 0x834   : > { %v1242_v35 = vpop.f32.mrb[10].mxu1 }
 0x835   : > { %v1470_v37 = vpop.f32.mrb[11].mxu1 }
 0x836   : > { %v1154_v44 = vpop.xlane.xlu0 %1153 }
 0x854   : > { %1157 = vadd.xlane.f32.xlu1 %v1156_v39 }
 0x865   : > { %1264 = vrot.lane.b32.xlu1 %v1136_v41, %s1552_s24 }
 0x869   : > { %1282 = vrot.lane.b32.xlu1 %v1733_v56, %s1545_s18 }
 0x89e   : > { %v1259_v13 = vpop.permute.xlu1 %1258 }
 0x89f   : > { %1262 = vst.msk [vmem:[%s1875_s30] sm:$0xff] %vm1261_vm13, %v1259_v13 }
 0x8a2   : > { %v1271_v25 = vpop.permute.xlu1 %1270 }
 0x8a5   : > { %v1277_v48 = vpop.permute.xlu0 %1276 }
 0x8e1   : > { %v1158_v43 = vpop.xlane.xlu1 %1157 }
 0x8e5   : > { %v1265_v45 = vpop.permute.xlu1 %1264 }
 0x8e6   : > { %1268 = vst.msk [vmem:[%s1875_s30] sm:$0xff] %vm1267_vm14, %v1265_v45 }
 0x8e7   : > { %1274 = vst.msk [vmem:[%s1875_s30] sm:$0xff] %vm1273_vm15, %v1271_v25 }
 0x8e8   : > { %1280 = vst.msk [vmem:[%s1875_s30] sm:$0xff] %vm1279_vm0, %v1277_v48 }
 0x8e9   : > { %v1283_v56 = vpop.permute.xlu1 %1282 }
 0x8ea   : > { %1286 = vst.msk [vmem:[%s1875_s30] sm:$0xff] %vm1285_vm1, %v1283_v56 }
 0x8eb   : > { %1288 = vst.msk [vmem:[%s1875_s30] sm:$0xff] %vm1287_vm2, %v1158_v43 }
 0x8ec   : > { %1290 = vst.msk [vmem:[%s1875_s30] sm:$0xff] %vm1289_vm3, %v1154_v44 }
 0x8ed   : > { %1292 = vst.msk [vmem:[%s1875_s30] sm:$0xff] %vm1291_vm4, %v1039_v42 }
 0x8ee   : > { %1294 = vst.msk [vmem:[%s1875_s30] sm:$0xff] %vm1293_vm5, %v1540_v1 }
 0x8ef PF: > { %s21_s17 = sadd.s32 1, %s1538_s17  }
 0x8f0   : > { %p18_p5 = scmp.ge.s32.totalorder %s21_s17, 4  }
 0x8f2   :  { %20 = sbr.rel (!%p18_p5) target bundleno = 1 (0x1), region = 97 }

</bundles_post_ra>
